<compile_context>
chip_gen: v6e
topology: v6e:2x2x1
jax: 0.10.0
libtpu: 0.0.40
codegen_flags: <defaults>
</compile_context>

<pallas_src>
import jax
import jax.numpy as jnp
import numpy as np
from jax.experimental import pallas as pl
from jax.experimental.pallas import tpu as pltpu

LEAKY_SLOPE = 0.01   # nn.LeakyReLU() default
BN_EPS = 1e-5        # nn.BatchNorm2d default


# ----------------------------------------------------------------------------
# Host-side weight preparation: banded matrices for the "rows x (W*C)" layout.
#
# Activations live as 2-D tiles A[h, w*C + c].  A 3x3 conv (pad=1) becomes
#   Y = sum_{dy in 0..2}  A_pad[dy : dy+H, :] @ Band[dy]
# where A_pad has one zero row above/below and Band[dy] (W_in*Cin, W_out*Cout)
# carries the three dx taps (horizontal padding and the column stride are
# folded into Band).  Everything stays lane-dense.
# ----------------------------------------------------------------------------
def _make_band(w_hwio, w_in, stride):
    kh, kw, cin, cout = w_hwio.shape
    assert (kh, kw) == (3, 3)
    w_out = (w_in + 2 - 3) // stride + 1          # pad=1, kernel=3 (PyTorch floor)
    taps = np.zeros((3, w_in, w_out), np.float32)
    for dx in range(3):
        for j in range(w_out):
            c = stride * j + dx - 1               # unpadded input column
            if 0 <= c < w_in:
                taps[dx, c, j] = 1.0
    # Band[dy, c*Cin+ci, j*Cout+co] = sum_dx taps[dx,c,j] * w[dy,dx,ci,co]
    band = jnp.einsum("xcj,yxio->ycijo", jnp.asarray(taps), w_hwio)
    return band.reshape(3, w_in * cin, w_out * cout)


def _even_row_selector(h):
    hd = (h + 2 - 3) // 2 + 1
    s = np.zeros((hd, h), np.float32)
    s[np.arange(hd), 2 * np.arange(hd)] = 1.0
    return s


# ----------------------------------------------------------------------------
# Fused Pallas kernel: conv1 -> conv2 (skip) -> stride-2 conv, all in VMEM.
# ----------------------------------------------------------------------------
def _encoding_block_kernel(x_ref, band1_ref, band2_ref, band3_ref, sel_ref,
                           s1_ref, t1_ref, s2_ref, t2_ref, s3_ref, t3_ref,
                           skip_ref, down_ref, pin_ref, pact_ref):
    # x_ref:     (1, H, W*Cin)          one batch image, lane-dense rows
    # bandK_ref: (3, K_in, K_out)       banded conv weights (dy-major)
    # sel_ref:   (Hd, H)                even-row selection (vertical stride 2)
    # sK/tK_ref: (1, K_out)             folded BN scale / bias, tiled per column
    # skip_ref:  (1, H, W*Cout)         conv2 output (skip connection)
    # down_ref:  (1, Hd, Wd*Cout)       downsampled output
    # pin_ref:   (H+2, W*Cin)  VMEM     zero-padded (rows) input scratch
    # pact_ref:  (H+2, W*Cout) VMEM     zero-padded (rows) activation scratch
    H = x_ref.shape[1]

    def band_conv(src_ref, band_ref):
        n_out = band_ref.shape[2]
        acc = jnp.zeros((H, n_out), jnp.float32)
        for dy in range(3):                                   # static unroll
            acc = acc + jnp.dot(src_ref[dy:dy + H, :], band_ref[dy],
                                preferred_element_type=jnp.float32)
        return acc

    def affine_lrelu(y, s_ref, t_ref):
        y = y * s_ref[...] + t_ref[...]                       # folded BatchNorm
        return jnp.maximum(y, LEAKY_SLOPE * y)                # LeakyReLU

    # In-kernel zero padding: zero the scratch, write the interior rows.
    pin_ref[...] = jnp.zeros_like(pin_ref)
    pact_ref[...] = jnp.zeros_like(pact_ref)
    pin_ref[1:H + 1, :] = x_ref[0]

    # conv1 -> BN -> LeakyReLU
    y1 = affine_lrelu(band_conv(pin_ref, band1_ref), s1_ref, t1_ref)
    pact_ref[1:H + 1, :] = y1

    # conv2 -> BN -> LeakyReLU  (skip connection, lane-dense store)
    y2 = affine_lrelu(band_conv(pact_ref, band2_ref), s2_ref, t2_ref)
    skip_ref[0] = y2.astype(skip_ref.dtype)
    pact_ref[1:H + 1, :] = y2

    # downsample: 3x3 conv, stride 2, pad 1 -> BN -> LeakyReLU
    # (column stride folded into band3; row stride via even-row selection matmul)
    y3 = band_conv(pact_ref, band3_ref)                       # (H, Wd*Cout)
    d = jnp.dot(sel_ref[...], y3, preferred_element_type=jnp.float32)  # (Hd, Wd*Cout)
    d = affine_lrelu(d, s3_ref, t3_ref)
    down_ref[0] = d.astype(down_ref.dtype)


# ----------------------------------------------------------------------------
# EncodingBlock forward (downsample='conv'), NCHW in / NCHW out like PyTorch.
# ----------------------------------------------------------------------------
def encoding_block_forward(x_nchw, params):
    B, Cin, H, W = x_nchw.shape
    Cout = params["w1"].shape[-1]
    Hd = (H + 2 - 3) // 2 + 1
    Wd = (W + 2 - 3) // 2 + 1

    # NCHW -> NHWC -> lane-dense (B, H, W*C) rows (free reshape).
    x = jnp.transpose(x_nchw, (0, 2, 3, 1)).reshape(B, H, W * Cin)

    band1 = _make_band(params["w1"], W, 1)        # (3, W*Cin,  W*Cout)
    band2 = _make_band(params["w2"], W, 1)        # (3, W*Cout, W*Cout)
    band3 = _make_band(params["w3"], W, 2)        # (3, W*Cout, Wd*Cout)
    sel = jnp.asarray(_even_row_selector(H))      # (Hd, H)

    s1 = jnp.tile(params["s1"], W).reshape(1, W * Cout)
    t1 = jnp.tile(params["b1"], W).reshape(1, W * Cout)
    s2 = jnp.tile(params["s2"], W).reshape(1, W * Cout)
    t2 = jnp.tile(params["b2"], W).reshape(1, W * Cout)
    s3 = jnp.tile(params["s3"], Wd).reshape(1, Wd * Cout)
    t3 = jnp.tile(params["b3"], Wd).reshape(1, Wd * Cout)

    skip, down = pl.pallas_call(
        _encoding_block_kernel,
        out_shape=(
            jax.ShapeDtypeStruct((B, H, W * Cout), x_nchw.dtype),
            jax.ShapeDtypeStruct((B, Hd, Wd * Cout), x_nchw.dtype),
        ),
        grid=(B,),
        in_specs=[
            pl.BlockSpec((1, H, W * Cin), lambda b: (b, 0, 0)),
            pl.BlockSpec((3, W * Cin, W * Cout), lambda b: (0, 0, 0)),
            pl.BlockSpec((3, W * Cout, W * Cout), lambda b: (0, 0, 0)),
            pl.BlockSpec((3, W * Cout, Wd * Cout), lambda b: (0, 0, 0)),
            pl.BlockSpec((Hd, H), lambda b: (0, 0)),
            pl.BlockSpec((1, W * Cout), lambda b: (0, 0)),
            pl.BlockSpec((1, W * Cout), lambda b: (0, 0)),
            pl.BlockSpec((1, W * Cout), lambda b: (0, 0)),
            pl.BlockSpec((1, W * Cout), lambda b: (0, 0)),
            pl.BlockSpec((1, Wd * Cout), lambda b: (0, 0)),
            pl.BlockSpec((1, Wd * Cout), lambda b: (0, 0)),
        ],
        out_specs=(
            pl.BlockSpec((1, H, W * Cout), lambda b: (b, 0, 0)),
            pl.BlockSpec((1, Hd, Wd * Cout), lambda b: (b, 0, 0)),
        ),
        scratch_shapes=[
            pltpu.VMEM((H + 2, W * Cin), jnp.float32),
            pltpu.VMEM((H + 2, W * Cout), jnp.float32),
        ],
        compiler_params=pltpu.CompilerParams(dimension_semantics=("parallel",)),
    )(x, band1, band2, band3, sel, s1, t1, s2, t2, s3, t3)

    skip_nhwc = skip.reshape(B, H, W, Cout)
    down_nhwc = down.reshape(B, Hd, Wd, Cout)
    # TODO(synk): keep NHWC end-to-end if the surrounding model can consume it,
    # to avoid these full-tensor transposes at the interface.
    return (jnp.transpose(down_nhwc, (0, 3, 1, 2)),
            jnp.transpose(skip_nhwc, (0, 3, 1, 2)))


# ----------------------------------------------------------------------------
# Parameters (deterministic, synthetic). BN is folded using running stats.
# ----------------------------------------------------------------------------
def _make_conv_bn_params(key, cin, cout):
    k1, k2, k3, k4, k5, k6 = jax.random.split(key, 6)
    w = jax.random.normal(k1, (3, 3, cin, cout), jnp.float32) / np.sqrt(9.0 * cin)
    conv_b = 0.1 * jax.random.normal(k2, (cout,), jnp.float32)
    gamma = 1.0 + 0.1 * jax.random.normal(k3, (cout,), jnp.float32)
    beta = 0.1 * jax.random.normal(k4, (cout,), jnp.float32)
    run_mean = 0.1 * jax.random.normal(k5, (cout,), jnp.float32)
    run_var = jnp.abs(jax.random.normal(k6, (cout,), jnp.float32)) + 0.5
    scale = gamma / jnp.sqrt(run_var + BN_EPS)
    bias = (conv_b - run_mean) * scale + beta
    return w, scale, bias


def make_encoding_block_params(key, in_channels, out_channels):
    k1, k2, k3 = jax.random.split(key, 3)
    w1, s1, b1 = _make_conv_bn_params(k1, in_channels, out_channels)
    w2, s2, b2 = _make_conv_bn_params(k2, out_channels, out_channels)
    w3, s3, b3 = _make_conv_bn_params(k3, out_channels, out_channels)   # downsample conv
    return dict(w1=w1, s1=s1, b1=b1, w2=w2, s2=s2, b2=b2, w3=w3, s3=s3, b3=b3)


# ----------------------------------------------------------------------------
# Pure-JAX reference for verification
# ----------------------------------------------------------------------------
def _ref_conv_bn_lrelu(x_nhwc, w, scale, bias, stride):
    y = jax.lax.conv_general_dilated(
        x_nhwc, w, (stride, stride), ((1, 1), (1, 1)),
        dimension_numbers=("NHWC", "HWIO", "NHWC"))
    y = y * scale + bias
    return jnp.where(y >= 0, y, LEAKY_SLOPE * y)


def encoding_block_reference(x_nchw, params):
    x = jnp.transpose(x_nchw, (0, 2, 3, 1))
    x = _ref_conv_bn_lrelu(x, params["w1"], params["s1"], params["b1"], 1)
    x = _ref_conv_bn_lrelu(x, params["w2"], params["s2"], params["b2"], 1)
    r = x
    d = _ref_conv_bn_lrelu(x, params["w3"], params["s3"], params["b3"], 2)
    return jnp.transpose(d, (0, 3, 1, 2)), jnp.transpose(r, (0, 3, 1, 2))


if __name__ == "__main__":
    B, C_IN, C_OUT, H, W = 2, 4, 8, 16, 16

    key = jax.random.PRNGKey(0)
    k_x, k_p = jax.random.split(key)
    x = jax.random.normal(k_x, (B, C_IN, H, W), jnp.float32)   # NCHW like PyTorch
    params = make_encoding_block_params(k_p, C_IN, C_OUT)

    down, skip = jax.jit(encoding_block_forward)(x, params)
    down = jax.block_until_ready(down)
    skip = jax.block_until_ready(skip)

    assert down.shape == (B, C_OUT, H // 2, W // 2), down.shape
    assert skip.shape == (B, C_OUT, H, W), skip.shape

    ref_down, ref_skip = encoding_block_reference(x, params)
    np.testing.assert_allclose(np.asarray(down), np.asarray(ref_down), rtol=1e-4, atol=1e-4)
    np.testing.assert_allclose(np.asarray(skip), np.asarray(ref_skip), rtol=1e-4, atol=1e-4)

    print("KERNEL_OK")
</pallas_src>

<mosaic_0001>
module attributes {stable_mosaic.version = 11 : i64} {
  func.func @_encoding_block_kernel(%arg0: i32, %arg1: memref<1x16x64xf32, #tpu.memory_space<vmem>>, %arg2: memref<3x64x128xf32, #tpu.memory_space<vmem>>, %arg3: memref<3x128x128xf32, #tpu.memory_space<vmem>>, %arg4: memref<3x128x64xf32, #tpu.memory_space<vmem>>, %arg5: memref<8x16xf32, #tpu.memory_space<vmem>>, %arg6: memref<1x128xf32, #tpu.memory_space<vmem>>, %arg7: memref<1x128xf32, #tpu.memory_space<vmem>>, %arg8: memref<1x128xf32, #tpu.memory_space<vmem>>, %arg9: memref<1x128xf32, #tpu.memory_space<vmem>>, %arg10: memref<1x64xf32, #tpu.memory_space<vmem>>, %arg11: memref<1x64xf32, #tpu.memory_space<vmem>>, %arg12: memref<1x16x128xf32, #tpu.memory_space<vmem>>, %arg13: memref<1x8x64xf32, #tpu.memory_space<vmem>>, %arg14: memref<18x64xf32, #tpu.memory_space<vmem>>, %arg15: memref<18x128xf32, #tpu.memory_space<vmem>>) attributes {dimension_semantics = [#tpu.dimension_semantics<parallel>], iteration_bounds = array<i64: 2>, scalar_prefetch = 0 : i64, scratch_operands = 2 : i64, tpu.core_type = #tpu.core_type<tc>, window_params = [{transform_indices = @transform_0, window_bounds = array<i64: 1, 16, 64>}, {pipeline_mode = #tpu.pipeline_mode<synchronous>, transform_indices = @transform_1, window_bounds = array<i64: 3, 64, 128>}, {pipeline_mode = #tpu.pipeline_mode<synchronous>, transform_indices = @transform_2, window_bounds = array<i64: 3, 128, 128>}, {pipeline_mode = #tpu.pipeline_mode<synchronous>, transform_indices = @transform_3, window_bounds = array<i64: 3, 128, 64>}, {pipeline_mode = #tpu.pipeline_mode<synchronous>, transform_indices = @transform_4, window_bounds = array<i64: 8, 16>}, {pipeline_mode = #tpu.pipeline_mode<synchronous>, transform_indices = @transform_5, window_bounds = array<i64: 1, 128>}, {pipeline_mode = #tpu.pipeline_mode<synchronous>, transform_indices = @transform_6, window_bounds = array<i64: 1, 128>}, {pipeline_mode = #tpu.pipeline_mode<synchronous>, transform_indices = @transform_7, window_bounds = array<i64: 1, 128>}, {pipeline_mode = #tpu.pipeline_mode<synchronous>, transform_indices = @transform_8, window_bounds = array<i64: 1, 128>}, {pipeline_mode = #tpu.pipeline_mode<synchronous>, transform_indices = @transform_9, window_bounds = array<i64: 1, 64>}, {pipeline_mode = #tpu.pipeline_mode<synchronous>, transform_indices = @transform_10, window_bounds = array<i64: 1, 64>}, {transform_indices = @transform_11, window_bounds = array<i64: 1, 16, 128>}, {transform_indices = @transform_12, window_bounds = array<i64: 1, 8, 64>}]} {
    %cst = arith.constant 0.000000e+00 : f32
    %0 = vector.broadcast %cst : f32 to vector<18x64xf32>
    %c0 = arith.constant 0 : index
    %c0_0 = arith.constant 0 : index
    %1 = vector.load %arg14[%c0, %c0_0] : memref<18x64xf32, #tpu.memory_space<vmem>>, vector<18x64xf32>
    tpu.vector_store %arg14[%c0, %c0_0], %0 {strides = array<i32>} : memref<18x64xf32, #tpu.memory_space<vmem>>, vector<18x64xf32>,
    %cst_1 = arith.constant 0.000000e+00 : f32
    %2 = vector.broadcast %cst_1 : f32 to vector<18x128xf32>
    %c0_2 = arith.constant 0 : index
    %c0_3 = arith.constant 0 : index
    %3 = vector.load %arg15[%c0_2, %c0_3] : memref<18x128xf32, #tpu.memory_space<vmem>>, vector<18x128xf32>
    tpu.vector_store %arg15[%c0_2, %c0_3], %2 {strides = array<i32>} : memref<18x128xf32, #tpu.memory_space<vmem>>, vector<18x128xf32>,
    %c0_4 = arith.constant 0 : index
    %c0_5 = arith.constant 0 : index
    %c0_6 = arith.constant 0 : index
    %4 = vector.load %arg1[%c0_4, %c0_5, %c0_6] : memref<1x16x64xf32, #tpu.memory_space<vmem>>, vector<1x16x64xf32>
    %5 = vector.shape_cast %4 : vector<1x16x64xf32> to vector<16x64xf32>
    %c1 = arith.constant 1 : index
    %c0_7 = arith.constant 0 : index
    %6 = vector.load %arg14[%c1, %c0_7] : memref<18x64xf32, #tpu.memory_space<vmem>>, vector<16x64xf32>
    tpu.vector_store %arg14[%c1, %c0_7], %5 {strides = array<i32>} : memref<18x64xf32, #tpu.memory_space<vmem>>, vector<16x64xf32>,
    %cst_8 = arith.constant 0.000000e+00 : f32
    %7 = vector.broadcast %cst_8 : f32 to vector<16x128xf32>
    %c0_9 = arith.constant 0 : index
    %c0_10 = arith.constant 0 : index
    %8 = vector.load %arg14[%c0_9, %c0_10] : memref<18x64xf32, #tpu.memory_space<vmem>>, vector<16x64xf32>
    %c0_11 = arith.constant 0 : index
    %c0_12 = arith.constant 0 : index
    %c0_13 = arith.constant 0 : index
    %9 = vector.load %arg2[%c0_11, %c0_12, %c0_13] : memref<3x64x128xf32, #tpu.memory_space<vmem>>, vector<1x64x128xf32>
    %10 = vector.shape_cast %9 : vector<1x64x128xf32> to vector<64x128xf32>
    %cst_14 = arith.constant dense<0.000000e+00> : vector<16x128xf32>
    %11 = tpu.matmul %8, %10, %cst_14 {dimension_numbers = #tpu.dot_dimension_numbers<[1], [0], [0], [1], [0, 0, 1, 1], [], []>} : vector<16x64xf32>, vector<64x128xf32>, vector<16x128xf32> -> vector<16x128xf32>
    %12 = arith.addf %7, %11 : vector<16x128xf32>
    %c1_15 = arith.constant 1 : index
    %c0_16 = arith.constant 0 : index
    %13 = vector.load %arg14[%c1_15, %c0_16] : memref<18x64xf32, #tpu.memory_space<vmem>>, vector<16x64xf32>
    %c1_17 = arith.constant 1 : index
    %c0_18 = arith.constant 0 : index
    %c0_19 = arith.constant 0 : index
    %14 = vector.load %arg2[%c1_17, %c0_18, %c0_19] : memref<3x64x128xf32, #tpu.memory_space<vmem>>, vector<1x64x128xf32>
    %15 = vector.shape_cast %14 : vector<1x64x128xf32> to vector<64x128xf32>
    %cst_20 = arith.constant dense<0.000000e+00> : vector<16x128xf32>
    %16 = tpu.matmul %13, %15, %cst_20 {dimension_numbers = #tpu.dot_dimension_numbers<[1], [0], [0], [1], [0, 0, 1, 1], [], []>} : vector<16x64xf32>, vector<64x128xf32>, vector<16x128xf32> -> vector<16x128xf32>
    %17 = arith.addf %12, %16 : vector<16x128xf32>
    %c2 = arith.constant 2 : index
    %c0_21 = arith.constant 0 : index
    %18 = vector.load %arg14[%c2, %c0_21] : memref<18x64xf32, #tpu.memory_space<vmem>>, vector<16x64xf32>
    %c2_22 = arith.constant 2 : index
    %c0_23 = arith.constant 0 : index
    %c0_24 = arith.constant 0 : index
    %19 = vector.load %arg2[%c2_22, %c0_23, %c0_24] : memref<3x64x128xf32, #tpu.memory_space<vmem>>, vector<1x64x128xf32>
    %20 = vector.shape_cast %19 : vector<1x64x128xf32> to vector<64x128xf32>
    %cst_25 = arith.constant dense<0.000000e+00> : vector<16x128xf32>
    %21 = tpu.matmul %18, %20, %cst_25 {dimension_numbers = #tpu.dot_dimension_numbers<[1], [0], [0], [1], [0, 0, 1, 1], [], []>} : vector<16x64xf32>, vector<64x128xf32>, vector<16x128xf32> -> vector<16x128xf32>
    %22 = arith.addf %17, %21 : vector<16x128xf32>
    %c0_26 = arith.constant 0 : index
    %c0_27 = arith.constant 0 : index
    %23 = vector.load %arg6[%c0_26, %c0_27] : memref<1x128xf32, #tpu.memory_space<vmem>>, vector<1x128xf32>
    %24 = vector.broadcast %23 : vector<1x128xf32> to vector<16x128xf32>
    %25 = arith.mulf %22, %24 : vector<16x128xf32>
    %c0_28 = arith.constant 0 : index
    %c0_29 = arith.constant 0 : index
    %26 = vector.load %arg7[%c0_28, %c0_29] : memref<1x128xf32, #tpu.memory_space<vmem>>, vector<1x128xf32>
    %27 = vector.broadcast %26 : vector<1x128xf32> to vector<16x128xf32>
    %28 = arith.addf %25, %27 : vector<16x128xf32>
    %cst_30 = arith.constant 0.00999999977 : f32
    %29 = vector.broadcast %cst_30 : f32 to vector<16x128xf32>
    %30 = arith.mulf %29, %28 : vector<16x128xf32>
    %31 = arith.maximumf %28, %30 : vector<16x128xf32>
    %c1_31 = arith.constant 1 : index
    %c0_32 = arith.constant 0 : index
    %32 = vector.load %arg15[%c1_31, %c0_32] : memref<18x128xf32, #tpu.memory_space<vmem>>, vector<16x128xf32>
    tpu.vector_store %arg15[%c1_31, %c0_32], %31 {strides = array<i32>} : memref<18x128xf32, #tpu.memory_space<vmem>>, vector<16x128xf32>,
    %cst_33 = arith.constant 0.000000e+00 : f32
    %33 = vector.broadcast %cst_33 : f32 to vector<16x128xf32>
    %c0_34 = arith.constant 0 : index
    %c0_35 = arith.constant 0 : index
    %34 = vector.load %arg15[%c0_34, %c0_35] : memref<18x128xf32, #tpu.memory_space<vmem>>, vector<16x128xf32>
    %c0_36 = arith.constant 0 : index
    %c0_37 = arith.constant 0 : index
    %c0_38 = arith.constant 0 : index
    %35 = vector.load %arg3[%c0_36, %c0_37, %c0_38] : memref<3x128x128xf32, #tpu.memory_space<vmem>>, vector<1x128x128xf32>
    %36 = vector.shape_cast %35 : vector<1x128x128xf32> to vector<128x128xf32>
    %cst_39 = arith.constant dense<0.000000e+00> : vector<16x128xf32>
    %37 = tpu.matmul %34, %36, %cst_39 {dimension_numbers = #tpu.dot_dimension_numbers<[1], [0], [0], [1], [0, 0, 1, 1], [], []>} : vector<16x128xf32>, vector<128x128xf32>, vector<16x128xf32> -> vector<16x128xf32>
    %38 = arith.addf %33, %37 : vector<16x128xf32>
    %c1_40 = arith.constant 1 : index
    %c0_41 = arith.constant 0 : index
    %39 = vector.load %arg15[%c1_40, %c0_41] : memref<18x128xf32, #tpu.memory_space<vmem>>, vector<16x128xf32>
    %c1_42 = arith.constant 1 : index
    %c0_43 = arith.constant 0 : index
    %c0_44 = arith.constant 0 : index
    %40 = vector.load %arg3[%c1_42, %c0_43, %c0_44] : memref<3x128x128xf32, #tpu.memory_space<vmem>>, vector<1x128x128xf32>
    %41 = vector.shape_cast %40 : vector<1x128x128xf32> to vector<128x128xf32>
    %cst_45 = arith.constant dense<0.000000e+00> : vector<16x128xf32>
    %42 = tpu.matmul %39, %41, %cst_45 {dimension_numbers = #tpu.dot_dimension_numbers<[1], [0], [0], [1], [0, 0, 1, 1], [], []>} : vector<16x128xf32>, vector<128x128xf32>, vector<16x128xf32> -> vector<16x128xf32>
    %43 = arith.addf %38, %42 : vector<16x128xf32>
    %c2_46 = arith.constant 2 : index
    %c0_47 = arith.constant 0 : index
    %44 = vector.load %arg15[%c2_46, %c0_47] : memref<18x128xf32, #tpu.memory_space<vmem>>, vector<16x128xf32>
    %c2_48 = arith.constant 2 : index
    %c0_49 = arith.constant 0 : index
    %c0_50 = arith.constant 0 : index
    %45 = vector.load %arg3[%c2_48, %c0_49, %c0_50] : memref<3x128x128xf32, #tpu.memory_space<vmem>>, vector<1x128x128xf32>
    %46 = vector.shape_cast %45 : vector<1x128x128xf32> to vector<128x128xf32>
    %cst_51 = arith.constant dense<0.000000e+00> : vector<16x128xf32>
    %47 = tpu.matmul %44, %46, %cst_51 {dimension_numbers = #tpu.dot_dimension_numbers<[1], [0], [0], [1], [0, 0, 1, 1], [], []>} : vector<16x128xf32>, vector<128x128xf32>, vector<16x128xf32> -> vector<16x128xf32>
    %48 = arith.addf %43, %47 : vector<16x128xf32>
    %c0_52 = arith.constant 0 : index
    %c0_53 = arith.constant 0 : index
    %49 = vector.load %arg8[%c0_52, %c0_53] : memref<1x128xf32, #tpu.memory_space<vmem>>, vector<1x128xf32>
    %50 = vector.broadcast %49 : vector<1x128xf32> to vector<16x128xf32>
    %51 = arith.mulf %48, %50 : vector<16x128xf32>
    %c0_54 = arith.constant 0 : index
    %c0_55 = arith.constant 0 : index
    %52 = vector.load %arg9[%c0_54, %c0_55] : memref<1x128xf32, #tpu.memory_space<vmem>>, vector<1x128xf32>
    %53 = vector.broadcast %52 : vector<1x128xf32> to vector<16x128xf32>
    %54 = arith.addf %51, %53 : vector<16x128xf32>
    %cst_56 = arith.constant 0.00999999977 : f32
    %55 = vector.broadcast %cst_56 : f32 to vector<16x128xf32>
    %56 = arith.mulf %55, %54 : vector<16x128xf32>
    %57 = arith.maximumf %54, %56 : vector<16x128xf32>
    %c0_57 = arith.constant 0 : index
    %c0_58 = arith.constant 0 : index
    %c0_59 = arith.constant 0 : index
    %58 = vector.load %arg12[%c0_57, %c0_58, %c0_59] : memref<1x16x128xf32, #tpu.memory_space<vmem>>, vector<1x16x128xf32>
    %59 = vector.shape_cast %58 : vector<1x16x128xf32> to vector<16x128xf32>
    %60 = vector.shape_cast %57 : vector<16x128xf32> to vector<1x16x128xf32>
    tpu.vector_store %arg12[%c0_57, %c0_58, %c0_59], %60 {strides = array<i32>} : memref<1x16x128xf32, #tpu.memory_space<vmem>>, vector<1x16x128xf32>,
    %c1_60 = arith.constant 1 : index
    %c0_61 = arith.constant 0 : index
    %61 = vector.load %arg15[%c1_60, %c0_61] : memref<18x128xf32, #tpu.memory_space<vmem>>, vector<16x128xf32>
    tpu.vector_store %arg15[%c1_60, %c0_61], %57 {strides = array<i32>} : memref<18x128xf32, #tpu.memory_space<vmem>>, vector<16x128xf32>,
    %cst_62 = arith.constant 0.000000e+00 : f32
    %62 = vector.broadcast %cst_62 : f32 to vector<16x64xf32>
    %c0_63 = arith.constant 0 : index
    %c0_64 = arith.constant 0 : index
    %63 = vector.load %arg15[%c0_63, %c0_64] : memref<18x128xf32, #tpu.memory_space<vmem>>, vector<16x128xf32>
    %c0_65 = arith.constant 0 : index
    %c0_66 = arith.constant 0 : index
    %c0_67 = arith.constant 0 : index
    %64 = vector.load %arg4[%c0_65, %c0_66, %c0_67] : memref<3x128x64xf32, #tpu.memory_space<vmem>>, vector<1x128x64xf32>
    %65 = vector.shape_cast %64 : vector<1x128x64xf32> to vector<128x64xf32>
    %cst_68 = arith.constant dense<0.000000e+00> : vector<16x64xf32>
    %66 = tpu.matmul %63, %65, %cst_68 {dimension_numbers = #tpu.dot_dimension_numbers<[1], [0], [0], [1], [0, 0, 1, 1], [], []>} : vector<16x128xf32>, vector<128x64xf32>, vector<16x64xf32> -> vector<16x64xf32>
    %67 = arith.addf %62, %66 : vector<16x64xf32>
    %c1_69 = arith.constant 1 : index
    %c0_70 = arith.constant 0 : index
    %68 = vector.load %arg15[%c1_69, %c0_70] : memref<18x128xf32, #tpu.memory_space<vmem>>, vector<16x128xf32>
    %c1_71 = arith.constant 1 : index
    %c0_72 = arith.constant 0 : index
    %c0_73 = arith.constant 0 : index
    %69 = vector.load %arg4[%c1_71, %c0_72, %c0_73] : memref<3x128x64xf32, #tpu.memory_space<vmem>>, vector<1x128x64xf32>
    %70 = vector.shape_cast %69 : vector<1x128x64xf32> to vector<128x64xf32>
    %cst_74 = arith.constant dense<0.000000e+00> : vector<16x64xf32>
    %71 = tpu.matmul %68, %70, %cst_74 {dimension_numbers = #tpu.dot_dimension_numbers<[1], [0], [0], [1], [0, 0, 1, 1], [], []>} : vector<16x128xf32>, vector<128x64xf32>, vector<16x64xf32> -> vector<16x64xf32>
    %72 = arith.addf %67, %71 : vector<16x64xf32>
    %c2_75 = arith.constant 2 : index
    %c0_76 = arith.constant 0 : index
    %73 = vector.load %arg15[%c2_75, %c0_76] : memref<18x128xf32, #tpu.memory_space<vmem>>, vector<16x128xf32>
    %c2_77 = arith.constant 2 : index
    %c0_78 = arith.constant 0 : index
    %c0_79 = arith.constant 0 : index
    %74 = vector.load %arg4[%c2_77, %c0_78, %c0_79] : memref<3x128x64xf32, #tpu.memory_space<vmem>>, vector<1x128x64xf32>
    %75 = vector.shape_cast %74 : vector<1x128x64xf32> to vector<128x64xf32>
    %cst_80 = arith.constant dense<0.000000e+00> : vector<16x64xf32>
    %76 = tpu.matmul %73, %75, %cst_80 {dimension_numbers = #tpu.dot_dimension_numbers<[1], [0], [0], [1], [0, 0, 1, 1], [], []>} : vector<16x128xf32>, vector<128x64xf32>, vector<16x64xf32> -> vector<16x64xf32>
    %77 = arith.addf %72, %76 : vector<16x64xf32>
    %c0_81 = arith.constant 0 : index
    %c0_82 = arith.constant 0 : index
    %78 = vector.load %arg5[%c0_81, %c0_82] : memref<8x16xf32, #tpu.memory_space<vmem>>, vector<8x16xf32>
    %cst_83 = arith.constant dense<0.000000e+00> : vector<8x64xf32>
    %79 = tpu.matmul %78, %77, %cst_83 {dimension_numbers = #tpu.dot_dimension_numbers<[1], [0], [0], [1], [0, 0, 1, 1], [], []>} : vector<8x16xf32>, vector<16x64xf32>, vector<8x64xf32> -> vector<8x64xf32>
    %c0_84 = arith.constant 0 : index
    %c0_85 = arith.constant 0 : index
    %80 = vector.load %arg10[%c0_84, %c0_85] : memref<1x64xf32, #tpu.memory_space<vmem>>, vector<1x64xf32>
    %81 = vector.broadcast %80 : vector<1x64xf32> to vector<8x64xf32>
    %82 = arith.mulf %79, %81 : vector<8x64xf32>
    %c0_86 = arith.constant 0 : index
    %c0_87 = arith.constant 0 : index
    %83 = vector.load %arg11[%c0_86, %c0_87] : memref<1x64xf32, #tpu.memory_space<vmem>>, vector<1x64xf32>
    %84 = vector.broadcast %83 : vector<1x64xf32> to vector<8x64xf32>
    %85 = arith.addf %82, %84 : vector<8x64xf32>
    %cst_88 = arith.constant 0.00999999977 : f32
    %86 = vector.broadcast %cst_88 : f32 to vector<8x64xf32>
    %87 = arith.mulf %86, %85 : vector<8x64xf32>
    %88 = arith.maximumf %85, %87 : vector<8x64xf32>
    %c0_89 = arith.constant 0 : index
    %c0_90 = arith.constant 0 : index
    %c0_91 = arith.constant 0 : index
    %89 = vector.load %arg13[%c0_89, %c0_90, %c0_91] : memref<1x8x64xf32, #tpu.memory_space<vmem>>, vector<1x8x64xf32>
    %90 = vector.shape_cast %89 : vector<1x8x64xf32> to vector<8x64xf32>
    %91 = vector.shape_cast %88 : vector<8x64xf32> to vector<1x8x64xf32>
    tpu.vector_store %arg13[%c0_89, %c0_90, %c0_91], %91 {strides = array<i32>} : memref<1x8x64xf32, #tpu.memory_space<vmem>>, vector<1x8x64xf32>,
    return
  }
  func.func @transform_0(%arg0: i32) -> (i32, i32, i32) {
    %c0_i32 = arith.constant 0 : i32
    %c0_i32_0 = arith.constant 0 : i32
    %c0_i32_1 = arith.constant 0 : i32
    return %arg0, %c0_i32, %c0_i32_0 : i32, i32, i32
  }
  func.func @transform_1(%arg0: i32) -> (i32, i32, i32) {
    %c0_i32 = arith.constant 0 : i32
    %c0_i32_0 = arith.constant 0 : i32
    %c0_i32_1 = arith.constant 0 : i32
    %c0_i32_2 = arith.constant 0 : i32
    return %c0_i32, %c0_i32_0, %c0_i32_1 : i32, i32, i32
  }
  func.func @transform_2(%arg0: i32) -> (i32, i32, i32) {
    %c0_i32 = arith.constant 0 : i32
    %c0_i32_0 = arith.constant 0 : i32
    %c0_i32_1 = arith.constant 0 : i32
    %c0_i32_2 = arith.constant 0 : i32
    return %c0_i32, %c0_i32_0, %c0_i32_1 : i32, i32, i32
  }
  func.func @transform_3(%arg0: i32) -> (i32, i32, i32) {
    %c0_i32 = arith.constant 0 : i32
    %c0_i32_0 = arith.constant 0 : i32
    %c0_i32_1 = arith.constant 0 : i32
    %c0_i32_2 = arith.constant 0 : i32
    return %c0_i32, %c0_i32_0, %c0_i32_1 : i32, i32, i32
  }
  func.func @transform_4(%arg0: i32) -> (i32, i32) {
    %c0_i32 = arith.constant 0 : i32
    %c0_i32_0 = arith.constant 0 : i32
    %c0_i32_1 = arith.constant 0 : i32
    return %c0_i32, %c0_i32_0 : i32, i32
  }
  func.func @transform_5(%arg0: i32) -> (i32, i32) {
    %c0_i32 = arith.constant 0 : i32
    %c0_i32_0 = arith.constant 0 : i32
    %c0_i32_1 = arith.constant 0 : i32
    return %c0_i32, %c0_i32_0 : i32, i32
  }
  func.func @transform_6(%arg0: i32) -> (i32, i32) {
    %c0_i32 = arith.constant 0 : i32
    %c0_i32_0 = arith.constant 0 : i32
    %c0_i32_1 = arith.constant 0 : i32
    return %c0_i32, %c0_i32_0 : i32, i32
  }
  func.func @transform_7(%arg0: i32) -> (i32, i32) {
    %c0_i32 = arith.constant 0 : i32
    %c0_i32_0 = arith.constant 0 : i32
    %c0_i32_1 = arith.constant 0 : i32
    return %c0_i32, %c0_i32_0 : i32, i32
  }
  func.func @transform_8(%arg0: i32) -> (i32, i32) {
    %c0_i32 = arith.constant 0 : i32
    %c0_i32_0 = arith.constant 0 : i32
    %c0_i32_1 = arith.constant 0 : i32
    return %c0_i32, %c0_i32_0 : i32, i32
  }
  func.func @transform_9(%arg0: i32) -> (i32, i32) {
    %c0_i32 = arith.constant 0 : i32
    %c0_i32_0 = arith.constant 0 : i32
    %c0_i32_1 = arith.constant 0 : i32
    return %c0_i32, %c0_i32_0 : i32, i32
  }
  func.func @transform_10(%arg0: i32) -> (i32, i32) {
    %c0_i32 = arith.constant 0 : i32
    %c0_i32_0 = arith.constant 0 : i32
    %c0_i32_1 = arith.constant 0 : i32
    return %c0_i32, %c0_i32_0 : i32, i32
  }
  func.func @transform_11(%arg0: i32) -> (i32, i32, i32) {
    %c0_i32 = arith.constant 0 : i32
    %c0_i32_0 = arith.constant 0 : i32
    %c0_i32_1 = arith.constant 0 : i32
    return %arg0, %c0_i32, %c0_i32_0 : i32, i32, i32
  }
  func.func @transform_12(%arg0: i32) -> (i32, i32, i32) {
    %c0_i32 = arith.constant 0 : i32
    %c0_i32_0 = arith.constant 0 : i32
    %c0_i32_1 = arith.constant 0 : i32
    return %arg0, %c0_i32, %c0_i32_0 : i32, i32, i32
  }
}

</mosaic_0001>

<bundles_post_ra>
// kernel: tile.33
= control target key start
LH: loop header
LB: loop body
LE: loop exit
PB: predicated region body
PF: predicated region fallthrough
CT: control target
= control target key end

     0   :  { %s28_s0 = inlined_call_operand.vmem [shape: f32[8], index: 0, kind: input, shape index: {}]   ;;  %s29_s1 = inlined_call_operand.vmem [shape: f32[16,8], index: 1, kind: output, shape index: {}]  }
   0x1   :  { %v4_v0 = vld [vmem:[%s28_s0] ss:$0 sm:$0xff] }
   0x2   :  { %5 = vst [vmem:[%s29_s1] sm:$0xff] %v4_v0  ;;  %8 = vst [vmem:[%s29_s1 + $0x8] sm:$0xff] %v4_v0 }

// kernel: tile.34
= control target key start
LH: loop header
LB: loop body
LE: loop exit
PB: predicated region body
PF: predicated region fallthrough
CT: control target
= control target key end

     0   :  { %s133_s10 = smov 120   ;;  %s134_s11 = smov 104   ;;  %vm3_vm0 = vcmask 64512   ;;  %vm9_vm1 = vcmask 1048512   ;;  %vm15_vm2 = vcmask 982912   ;;  %vm21_vm3 = vcmask 917312   ;;  %s209_s0 = inlined_call_operand.vmem [shape: f32[16,8], index: 0, kind: input, shape index: {}]   ;;  %s210_s1 = inlined_call_operand.vmem [shape: f32[1,128], index: 1, kind: output, shape index: {}]  }
   0x1   :  { %v103_v0 = vld [vmem:[%s209_s0 + $0xf] sm:$0x1]   ;;  %v105_v1 = vld [vmem:[%s209_s0 + $0xd] sm:$0x1]   ;;  %v104_v2 = vld [vmem:[%s209_s0 + $0xe] sm:$0x1]  }
   0x2   :  { %7 = vrot.lane.b32.xlu0 %v103_v0, %s133_s10  ;;  %19 = vrot.lane.b32.xlu1 %v105_v1, %s134_s11  ;;  %v106_v3 = vld [vmem:[%s209_s0 + $0xc] sm:$0x1]   ;;  %s135_s16 = smov 112   ;;  %s136_s17 = smov 96   ;;  %v107_v4 = vld [vmem:[%s209_s0 + $0xb] sm:$0x1]  }
   0x3   :  { %v108_v5 = vld [vmem:[%s209_s0 + $0xa] sm:$0x1]   ;;  %v2_v6 = vld [vmem:[%s209_s0] sm:$0x1]   ;;  %s137_s24 = smov 88   ;;  %s138_s25 = smov 80  }
   0x4   :  { %4 = vst.msk [vmem:[#allocation0] sm:$0x1] %vm3_vm0, %v2_v6   ;;  %v109_v7 = vld [vmem:[%s209_s0 + $0x9] sm:$0x1]   ;;  %v110_v8 = vld [vmem:[%s209_s0 + $0x8] sm:$0x1]  }
   0x5   :  { %s139_s30 = smov 72   ;;  %s140_s2 = smov 64   ;;  %v111_v9 = vld [vmem:[%s209_s0 + $0x7] sm:$0x1]   ;;  %v112_v10 = vld [vmem:[%s209_s0 + $0x6] sm:$0x1]  }
   0x6   :  { %13 = vrot.lane.b32.xlu0 %v104_v2, %s135_s16  ;;  %25 = vrot.lane.b32.xlu1 %v106_v3, %s136_s17  ;;  %s141_s7 = smov 56   ;;  %s142_s8 = smov 48   ;;  %v113_v11 = vld [vmem:[%s209_s0 + $0x5] sm:$0x1]   ;;  %v114_v12 = vld [vmem:[%s209_s0 + $0x4] sm:$0x1]  }
   0x7   :  { %s143_s13 = smov 40   ;;  %s144_s14 = smov 32   ;;  %v115_v13 = vld [vmem:[%s209_s0 + $0x3] sm:$0x1]   ;;  %v116_v14 = vld [vmem:[%s209_s0 + $0x2] sm:$0x1]  }
   0x8   :  { %s145_s19 = smov 24   ;;  %s146_s20 = smov 16   ;;  %v117_v15 = vld [vmem:[%s209_s0 + $0x1] sm:$0x1]   ;;  %vm27_vm4 = vcmask 851712   ;;  %vm33_vm5 = vcmask 786112  }
   0x9   :  { %s147_s0 = smov 8   ;;  %vm39_vm6 = vcmask 720512   ;;  %vm45_vm7 = vcmask 654912   ;;  %vm51_vm8 = vcmask 589312   ;;  %vm57_vm9 = vcmask 523712  }
   0xa   :  { %31 = vrot.lane.b32.xlu0 %v107_v4, %s137_s24  ;;  %37 = vrot.lane.b32.xlu1 %v108_v5, %s138_s25  ;;  %vm63_vm10 = vcmask 458112   ;;  %vm69_vm11 = vcmask 392512   ;;  %vm75_vm12 = vcmask 326912   ;;  %vm81_vm13 = vcmask 261312  }
   0xb   :  { %vm87_vm14 = vcmask 195712   ;;  %vm93_vm15 = vcmask 130112  }
   0xe   :  { %43 = vrot.lane.b32.xlu0 %v109_v7, %s139_s30  ;;  %49 = vrot.lane.b32.xlu1 %v110_v8, %s140_s2 }
  0x12   :  { %55 = vrot.lane.b32.xlu0 %v111_v9, %s141_s7  ;;  %61 = vrot.lane.b32.xlu1 %v112_v10, %s142_s8 }
  0x16   :  { %67 = vrot.lane.b32.xlu0 %v113_v11, %s143_s13  ;;  %73 = vrot.lane.b32.xlu1 %v114_v12, %s144_s14 }
  0x1a   :  { %79 = vrot.lane.b32.xlu0 %v115_v13, %s145_s19  ;;  %85 = vrot.lane.b32.xlu1 %v116_v14, %s146_s20 }
  0x1e   :  { %91 = vrot.lane.b32.xlu0 %v117_v15, %s147_s0 }
  0x74   :  { %v8_v16 = vpop.permute.xlu0 %7   ;;  %v20_v17 = vpop.permute.xlu1 %19  }
  0x75   :  { %10 = vst.msk [vmem:[#allocation0] sm:$0x1] %vm9_vm1, %v8_v16  }
  0x78   :  { %v14_v18 = vpop.permute.xlu0 %13   ;;  %v26_v19 = vpop.permute.xlu1 %25  }
  0x79   :  { %16 = vst.msk [vmem:[#allocation0] sm:$0x1] %vm15_vm2, %v14_v18  }
  0x7a   :  { %22 = vst.msk [vmem:[#allocation0] sm:$0x1] %vm21_vm3, %v20_v17  }
  0x7b   :  { %28 = vst.msk [vmem:[#allocation0] sm:$0x1] %vm27_vm4, %v26_v19  }
  0x7c   :  { %v32_v20 = vpop.permute.xlu0 %31   ;;  %v38_v21 = vpop.permute.xlu1 %37  }
  0x7d   :  { %34 = vst.msk [vmem:[#allocation0] sm:$0x1] %vm33_vm5, %v32_v20  }
  0x7e   :  { %40 = vst.msk [vmem:[#allocation0] sm:$0x1] %vm39_vm6, %v38_v21  }
  0x80   :  { %v44_v22 = vpop.permute.xlu0 %43   ;;  %v50_v23 = vpop.permute.xlu1 %49  }
  0x81   :  { %46 = vst.msk [vmem:[#allocation0] sm:$0x1] %vm45_vm7, %v44_v22  }
  0x82   :  { %52 = vst.msk [vmem:[#allocation0] sm:$0x1] %vm51_vm8, %v50_v23  }
  0x84   :  { %v56_v24 = vpop.permute.xlu0 %55   ;;  %v62_v25 = vpop.permute.xlu1 %61  }
  0x85   :  { %58 = vst.msk [vmem:[#allocation0] sm:$0x1] %vm57_vm9, %v56_v24  }
  0x86   :  { %64 = vst.msk [vmem:[#allocation0] sm:$0x1] %vm63_vm10, %v62_v25  }
  0x88   :  { %v68_v26 = vpop.permute.xlu0 %67   ;;  %v74_v27 = vpop.permute.xlu1 %73  }
  0x89   :  { %70 = vst.msk [vmem:[#allocation0] sm:$0x1] %vm69_vm11, %v68_v26  }
  0x8a   :  { %76 = vst.msk [vmem:[#allocation0] sm:$0x1] %vm75_vm12, %v74_v27  }
  0x8c   :  { %v80_v28 = vpop.permute.xlu0 %79   ;;  %v86_v29 = vpop.permute.xlu1 %85  }
  0x8d   :  { %82 = vst.msk [vmem:[#allocation0] sm:$0x1] %vm81_vm13, %v80_v28  }
  0x8e   :  { %88 = vst.msk [vmem:[#allocation0] sm:$0x1] %vm87_vm14, %v86_v29  }
  0x90   :  { %v92_v30 = vpop.permute.xlu0 %91  }
  0x91   :  { %94 = vst.msk [vmem:[#allocation0] sm:$0x1] %vm93_vm15, %v92_v30  }
  0x98   :  { %v99_v31 = vld [vmem:[#allocation0] sm:$0x1] }
  0x99   :  { %102 = vst [vmem:[%s210_s1] sm:$0x1] %v99_v31 }

// kernel: tile.53
= control target key start
LH: loop header
LB: loop body
LE: loop exit
PB: predicated region body
PF: predicated region fallthrough
CT: control target
= control target key end

     0   :  { %s22_s0 = inlined_call_operand.vmem [shape: f32[8], index: 0, kind: input, shape index: {}]   ;;  %s23_s1 = inlined_call_operand.vmem [shape: f32[8,8], index: 1, kind: output, shape index: {}]  }
   0x1   :  { %v4_v0 = vld [vmem:[%s22_s0] ss:$0 sm:$0xff] }
   0x2   :  { %5 = vst [vmem:[%s23_s1] sm:$0xff] %v4_v0 }

// kernel: tile.54
= control target key start
LH: loop header
LB: loop body
LE: loop exit
PB: predicated region body
PF: predicated region fallthrough
CT: control target
= control target key end

     0   :  { %s69_s10 = smov 56   ;;  %s70_s11 = smov 40   ;;  %vm3_vm0 = vcmask 64512   ;;  %vm9_vm1 = vcmask 523712   ;;  %vm15_vm2 = vcmask 458112   ;;  %vm21_vm3 = vcmask 392512   ;;  %s113_s0 = inlined_call_operand.vmem [shape: f32[8,8], index: 0, kind: input, shape index: {}]   ;;  %s114_s1 = inlined_call_operand.vmem [shape: f32[1,64], index: 1, kind: output, shape index: {}]  }
   0x1   :  { %v55_v0 = vld [vmem:[%s113_s0 + $0x7] sm:$0x1]   ;;  %v57_v1 = vld [vmem:[%s113_s0 + $0x5] sm:$0x1]   ;;  %v56_v2 = vld [vmem:[%s113_s0 + $0x6] sm:$0x1]  }
   0x2   :  { %7 = vrot.lane.b32.xlu0 %v55_v0, %s69_s10  ;;  %19 = vrot.lane.b32.xlu1 %v57_v1, %s70_s11  ;;  %v58_v3 = vld [vmem:[%s113_s0 + $0x4] sm:$0x1]   ;;  %v2_v4 = vld [vmem:[%s113_s0] sm:$0x1]   ;;  %s71_s18 = smov 48   ;;  %s72_s19 = smov 32  }
   0x3   :  { %4 = vst.msk [vmem:[#allocation0] sm:$0x1] %vm3_vm0, %v2_v4   ;;  %v59_v5 = vld [vmem:[%s113_s0 + $0x3] sm:$0x1]   ;;  %v60_v6 = vld [vmem:[%s113_s0 + $0x2] sm:$0x1]  }
   0x4   :  { %s73_s24 = smov 24   ;;  %s74_s25 = smov 16   ;;  %v61_v7 = vld [vmem:[%s113_s0 + $0x1] sm:$0x1]   ;;  %vm27_vm4 = vcmask 326912   ;;  %vm33_vm5 = vcmask 261312  }
   0x5   :  { %s75_s0 = smov 8   ;;  %vm39_vm6 = vcmask 195712   ;;  %vm45_vm7 = vcmask 130112  }
   0x6   :  { %13 = vrot.lane.b32.xlu0 %v56_v2, %s71_s18  ;;  %25 = vrot.lane.b32.xlu1 %v58_v3, %s72_s19 }
   0xa   :  { %31 = vrot.lane.b32.xlu0 %v59_v5, %s73_s24  ;;  %37 = vrot.lane.b32.xlu1 %v60_v6, %s74_s25 }
   0xe   :  { %43 = vrot.lane.b32.xlu0 %v61_v7, %s75_s0 }
  0x74   :  { %v8_v8 = vpop.permute.xlu0 %7   ;;  %v20_v9 = vpop.permute.xlu1 %19  }
  0x75   :  { %10 = vst.msk [vmem:[#allocation0] sm:$0x1] %vm9_vm1, %v8_v8  }
  0x78   :  { %v14_v10 = vpop.permute.xlu0 %13   ;;  %v26_v11 = vpop.permute.xlu1 %25  }
  0x79   :  { %16 = vst.msk [vmem:[#allocation0] sm:$0x1] %vm15_vm2, %v14_v10  }
  0x7a   :  { %22 = vst.msk [vmem:[#allocation0] sm:$0x1] %vm21_vm3, %v20_v9  }
  0x7b   :  { %28 = vst.msk [vmem:[#allocation0] sm:$0x1] %vm27_vm4, %v26_v11  }
  0x7c   :  { %v32_v12 = vpop.permute.xlu0 %31   ;;  %v38_v13 = vpop.permute.xlu1 %37  }
  0x7d   :  { %34 = vst.msk [vmem:[#allocation0] sm:$0x1] %vm33_vm5, %v32_v12  }
  0x7e   :  { %40 = vst.msk [vmem:[#allocation0] sm:$0x1] %vm39_vm6, %v38_v13  }
  0x80   :  { %v44_v14 = vpop.permute.xlu0 %43  }
  0x81   :  { %46 = vst.msk [vmem:[#allocation0] sm:$0x1] %vm45_vm7, %v44_v14  }
  0x88   :  { %v51_v15 = vld [vmem:[#allocation0] sm:$0x1] }
  0x89   :  { %54 = vst [vmem:[%s114_s1] sm:$0x1] %v51_v15 }

// kernel: encoding_block_forward.1
= control target key start
LH: loop header
LB: loop body
LE: loop exit
PB: predicated region body
PF: predicated region fallthrough
CT: control target
= control target key end

     0   :  { %s2117_s21 = smov 0   ;;  %s2552_s0 = inlined_call_operand.vmem [shape: f32[2,16,64], index: 0, kind: input, shape index: {}]   ;;  %s2553_s1 = inlined_call_operand.vmem [shape: f32[3,64,128], index: 1, kind: input, shape index: {}]   ;;  %s2554_s2 = inlined_call_operand.vmem [shape: f32[3,128,128], index: 2, kind: input, shape index: {}]   ;;  %s2555_s3 = inlined_call_operand.vmem [shape: f32[3,128,64], index: 3, kind: input, shape index: {}]   ;;  %s2556_s4 = inlined_call_operand.vmem [shape: f32[8,16], index: 4, kind: input, shape index: {}]   ;;  %s2557_s5 = inlined_call_operand.vmem [shape: f32[1,128], index: 5, kind: input, shape index: {}]   ;;  %s2558_s6 = inlined_call_operand.vmem [shape: f32[1,128], index: 6, kind: input, shape index: {}]   ;;  %s2559_s7 = inlined_call_operand.vmem [shape: f32[1,128], index: 7, kind: input, shape index: {}]   ;;  %s2560_s8 = inlined_call_operand.vmem [shape: f32[1,128], index: 8, kind: input, shape index: {}]   ;;  %s2561_s9 = inlined_call_operand.vmem [shape: f32[1,64], index: 9, kind: input, shape index: {}]   ;;  %s2562_s10 = inlined_call_operand.vmem [shape: f32[1,64], index: 10, kind: input, shape index: {}]   ;;  %s2563_s11 = inlined_call_operand.vmem [shape: f32[2,16,128], index: 11, kind: output, shape index: {0}]   ;;  %s2564_s12 = inlined_call_operand.vmem [shape: f32[2,8,64], index: 12, kind: output, shape index: {1}]  }
   0x1 LB: > { %s1510_s22 = sadd.s32 4294967295, %s2048_s21   ;;  %p1514_p0 = scmp.ge.s32.totalorder %s2048_s21, 1  ;;  %s2048_s21 = sphi %s2117_s21, %s23_s21  }
   0x2   : > { %p365_p1 = scmp.lt.s32.totalorder %s2048_s21, 3 }
   0x4   : > { %p366_p2 = pnand %p1514_p0, %p365_p1 }
   0x5   : > { %p2134_p3 = scmp.lt.s32.totalorder (!%p366_p2), %s1510_s22, 1 }
   0x6   : > { %369 = sbr.rel (%p366_p2) target bundleno = 924 (0x39c), region = 64 }
   0xb   : > { %v1527_v0 = vld [vmem:[%s2553_s1 + $0x78] sm:$0xff]  ;;  %v1526_v2 = vld [vmem:[%s2553_s1 + $0x70] sm:$0xff]  ;;  %vm425_vm0 = vcmask 523264   ;;  %v2050_v4 = vmov 0.0   ;;  %vm428_vm1 = vcmask 517120   ;;  %v1525_v5 = vld [vmem:[%s2553_s1 + $0x68] sm:$0xff] }
   0xc   : > { %v446_v1 = vld [vmem:[%s2553_s1 + $0x38] sm:$0xff]  ;;  %1758 = vmatprep.subr.mxu0 %v1527_v0  ;;  %v445_v3 = vld [vmem:[%s2553_s1 + $0x30] sm:$0xff]  ;;  %426 = vst.msk [vmem:[#allocation2] sm:$0xff] %vm425_vm0, %v2050_v4  ;;  %427 = vst.msk [vmem:[#allocation2 + $0x8] sm:$0xff] %vm425_vm0, %v2050_v4  ;;  %s2567_s22 = smov (!%p2134_p3, %s1510_s22), 1  ;;  %vm2051_vm2 = vmmov 0  }
   0xd   : > { %1777 = vmatprep.subr.mxu1 %v446_v1  ;;  %430 = vst [vmem:[#allocation3] sm:$0xff] %v2050_v4  ;;  %431 = vst [vmem:[#allocation3 + $0x8] sm:$0xff] %v2050_v4  ;;  %1759 = vmatpush3.msra.mxu0 %v1527_v0  ;;  %v444_v6 = vld [vmem:[%s2553_s1 + $0x28] sm:$0xff]  ;;  %v1524_v7 = vld [vmem:[%s2553_s1 + $0x60] sm:$0xff]  ;;  %s1615_s24 = sshll.u32 %s2567_s22, 4  ;;  %vm1331_vm3 = vcmask 130048  }
   0xe   : > { %432 = vst [vmem:[#allocation3 + $0x10] sm:$0x3] %v2050_v4  ;;  %1778 = vmatpush3.msra.mxu1 %v446_v1  ;;  %429 = vst.msk [vmem:[#allocation2 + $0x10] sm:$0x3] %vm428_vm1, %v2050_v4  ;;  %1760 = vmatprep.subr.mxu0 %v1526_v2  ;;  %v443_v8 = vld [vmem:[%s2553_s1 + $0x20] sm:$0xff]  ;;  %v1523_v9 = vld [vmem:[%s2553_s1 + $0x58] sm:$0xff]  ;;  %s415_s29 = scalar_lea.vmem %s2552_s0, %s1615_s24  ;;  %s420_s19 = scalar_lea.vmem %s2563_s11, %s1615_s24 }
   0xf   : > { %1779 = vmatprep.subr.mxu1 %v445_v3  ;;  %1761 = vmatpush3.msra.mxu0 %v1526_v2  ;;  %v442_v10 = vld [vmem:[%s2553_s1 + $0x18] sm:$0xff]  ;;  %v433_v11 = vld [vmem:[%s415_s29] sm:$0xff]  ;;  %v434_v12 = vld [vmem:[%s415_s29 + $0x8] sm:$0xff]  ;;  %s1519_s24 = sshll.u32 %s2567_s22, 3 }
  0x10   : > { %1780 = vmatpush3.msra.mxu1 %v445_v3  ;;  %1762 = vmatprep.subr.mxu0 %v1525_v5  ;;  %435 = vst.msk [vmem:[#allocation2 + $0x1] sm:$0xff] %vm425_vm0, %v433_v11  ;;  %436 = vst.msk [vmem:[#allocation2 + $0x9] sm:$0xff] %vm425_vm0, %v434_v12  ;;  %v1522_v13 = vld [vmem:[%s2553_s1 + $0x50] sm:$0xff]  ;;  %v1521_v15 = vld [vmem:[%s2553_s1 + $0x48] sm:$0xff]  ;;  %s424_s29 = scalar_lea.vmem %s2564_s12, %s1519_s24 }
  0x11   : > { %1781 = vmatprep.subr.mxu1 %v444_v6  ;;  %1763 = vmatpush3.msra.mxu0 %v1525_v5  ;;  %v441_v14 = vld [vmem:[%s2553_s1 + $0x10] sm:$0xff]  ;;  %v440_v16 = vld [vmem:[%s2553_s1 + $0x8] sm:$0xff]  ;;  %v1520_v17 = vld [vmem:[%s2553_s1 + $0x40] sm:$0xff] }
  0x12   : > { %1782 = vmatpush3.msra.mxu1 %v444_v6  ;;  %1764 = vmatprep.subr.mxu0 %v1524_v7  ;;  %v439_v18 = vld [vmem:[%s2553_s1] sm:$0xff]  ;;  %v1539_v23 = vld [vmem:[%s2553_s1 + $0xb8] sm:$0xff]  ;;  %v1538_v25 = vld [vmem:[%s2553_s1 + $0xb0] sm:$0xff] }
  0x13   : > { %1783 = vmatprep.subr.mxu1 %v443_v8  ;;  %1765 = vmatpush3.msra.mxu0 %v1524_v7  ;;  %v1537_v26 = vld [vmem:[%s2553_s1 + $0xa8] sm:$0xff]  ;;  %v1536_v27 = vld [vmem:[%s2553_s1 + $0xa0] sm:$0xff]  ;;  %v1535_v28 = vld [vmem:[%s2553_s1 + $0x98] sm:$0xff] }
  0x14   : > { %1784 = vmatpush3.msra.mxu1 %v443_v8  ;;  %1766 = vmatprep.subr.mxu0 %v1523_v9  ;;  %v1534_v29 = vld [vmem:[%s2553_s1 + $0x90] sm:$0xff]  ;;  %v1533_v30 = vld [vmem:[%s2553_s1 + $0x88] sm:$0xff]  ;;  %v1532_v31 = vld [vmem:[%s2553_s1 + $0x80] sm:$0xff] }
  0x15   : > { %1785 = vmatprep.subr.mxu1 %v442_v10  ;;  %1767 = vmatpush3.msra.mxu0 %v1523_v9  ;;  %v1559_v33 = vld [vmem:[%s2554_s2 + $0xf8] sm:$0xff]  ;;  %v1558_v34 = vld [vmem:[%s2554_s2 + $0xf0] sm:$0xff]  ;;  %v1557_v35 = vld [vmem:[%s2554_s2 + $0xe8] sm:$0xff] }
  0x16   : > { %1786 = vmatpush3.msra.mxu1 %v442_v10  ;;  %1768 = vmatprep.subr.mxu0 %v1522_v13  ;;  %v755_v36 = vld [vmem:[%s2554_s2 + $0x78] sm:$0xff]  ;;  %v754_v37 = vld [vmem:[%s2554_s2 + $0x70] sm:$0xff]  ;;  %v1556_v38 = vld [vmem:[%s2554_s2 + $0xe0] sm:$0xff] }
  0x17   : > { %1787 = vmatprep.subr.mxu1 %v441_v14  ;;  %1769 = vmatpush3.msra.mxu0 %v1522_v13  ;;  %v447_v19 = vld [vmem:[#allocation2 + $0x1] sm:$0xff]  ;;  %v448_v21 = vld [vmem:[#allocation2 + $0x9] sm:$0xff]  ;;  %v1555_v39 = vld [vmem:[%s2554_s2 + $0xd8] sm:$0xff] }
  0x18   : > { %1788 = vmatpush3.msra.mxu1 %v441_v14  ;;  %1770 = vmatprep.subr.mxu0 %v1521_v15  ;;  %v437_v20 = vld [vmem:[#allocation2] sm:$0xff]  ;;  %v438_v22 = vld [vmem:[#allocation2 + $0x8] sm:$0xff]  ;;  %v1554_v41 = vld [vmem:[%s2554_s2 + $0xd0] sm:$0xff] }
  0x19   : > { %1789 = vmatprep.subr.mxu1 %v440_v16  ;;  %1771 = vmatpush3.msra.mxu0 %v1521_v15  ;;  %v620_v24 = vld [vmem:[#allocation2 + $0x2] sm:$0xff]  ;;  %v621_v32 = vld [vmem:[#allocation2 + $0xa] sm:$0xff]  ;;  %v751_v43 = vld [vmem:[%s2554_s2 + $0x58] sm:$0xff] }
  0x1a   : > { %1790 = vmatpush3.msra.mxu1 %v440_v16  ;;  %1772 = vmatprep.subr.mxu0 %v1520_v17  ;;  %v753_v40 = vld [vmem:[%s2554_s2 + $0x68] sm:$0xff]  ;;  %v752_v42 = vld [vmem:[%s2554_s2 + $0x60] sm:$0xff]  ;;  %v1551_v46 = vld [vmem:[%s2554_s2 + $0xb8] sm:$0xff] }
  0x1b   : > { %1791 = vmatprep.subr.mxu1 %v439_v18  ;;  %1773 = vmatpush3.msra.mxu0 %v1520_v17  ;;  %v1553_v44 = vld [vmem:[%s2554_s2 + $0xc8] sm:$0xff]  ;;  %v1552_v45 = vld [vmem:[%s2554_s2 + $0xc0] sm:$0xff]  ;;  %v1550_v47 = vld [vmem:[%s2554_s2 + $0xb0] sm:$0xff] }
  0x1c   : > { %1774 = vmatprep.mubr.msk.f32.mxu0 %vm425_vm0, %v447_v19  ;;  %1792 = vmatpush3.msra.mxu1 %v439_v18  ;;  %v750_v48 = vld [vmem:[%s2554_s2 + $0x50] sm:$0xff]  ;;  %v1549_v49 = vld [vmem:[%s2554_s2 + $0xa8] sm:$0xff]  ;;  %v1548_v51 = vld [vmem:[%s2554_s2 + $0xa0] sm:$0xff] }
  0x1d   : > { %1793 = vmatprep.mubr.msk.f32.mxu1 %vm425_vm0, %v437_v20  ;;  %1775 = vmatmul.mubr.msk.f32.vlgmr.msra.gmra.mxu0 %vm425_vm0, %v448_v21  ;;  %v749_v50 = vld [vmem:[%s2554_s2 + $0x48] sm:$0xff]  ;;  %v748_v52 = vld [vmem:[%s2554_s2 + $0x40] sm:$0xff]  ;;  %v1547_v53 = vld [vmem:[%s2554_s2 + $0x98] sm:$0xff] }
  0x1e   : > { %1794 = vmatmul.mubr.msk.f32.vlgmr.msra.gmra.mxu1 %vm425_vm0, %v438_v22  ;;  %1796 = vmatprep.subr.mxu0 %v1539_v23  ;;  %v747_v54 = vld [vmem:[%s2554_s2 + $0x38] sm:$0xff]  ;;  %v1546_v55 = vld [vmem:[%s2554_s2 + $0x90] sm:$0xff]  ;;  %v1545_v57 = vld [vmem:[%s2554_s2 + $0x88] sm:$0xff] }
  0x1f   : > { %1812 = vmatprep.mubr.msk.f32.mxu0 %vm425_vm0, %v620_v24  ;;  %1797 = vmatpush3.msra.mxu0 %v1539_v23  ;;  %v746_v56 = vld [vmem:[%s2554_s2 + $0x30] sm:$0xff]  ;;  %v745_v58 = vld [vmem:[%s2554_s2 + $0x28] sm:$0xff]  ;;  %v1544_v59 = vld [vmem:[%s2554_s2 + $0x80] sm:$0xff] }
  0x20   : > { %1798 = vmatprep.subr.mxu0 %v1538_v25  ;;  %1815 = vmatprep.subr.mxu1 %v1559_v33  ;;  %v744_v60 = vld [vmem:[%s2554_s2 + $0x20] sm:$0xff]  ;;  %v1575_v61 = vld [vmem:[%s2554_s2 + $0x178] sm:$0xff]  ;;  %v742_v63 = vld [vmem:[%s2554_s2 + $0x10] sm:$0xff] }
  0x21   : > { %1799 = vmatpush3.msra.mxu0 %v1538_v25  ;;  %1816 = vmatpush3.msra.mxu1 %v1559_v33  ;;  %v743_v62 = vld [vmem:[%s2554_s2 + $0x18] sm:$0xff]  ;;  %v741_v0 = vld [vmem:[%s2554_s2 + $0x8] sm:$0xff]  ;;  %v740_v1 = vld [vmem:[%s2554_s2] sm:$0xff] }
  0x22   : > { %1800 = vmatprep.subr.mxu0 %v1537_v26  ;;  %1817 = vmatprep.subr.mxu1 %v1558_v34  ;;  %v1542_v9 = vld [vmem:[%s2557_s5] ss:$0 sm:$0xff]  ;;  %v1574_v23 = vld [vmem:[%s2554_s2 + $0x170] sm:$0xff]  ;;  %v1573_v24 = vld [vmem:[%s2554_s2 + $0x168] sm:$0xff] }
  0x23   : > { %1801 = vmatpush3.msra.mxu0 %v1537_v26  ;;  %1818 = vmatpush3.msra.mxu1 %v1558_v34  ;;  %v1543_v12 = vld [vmem:[%s2558_s6] ss:$0 sm:$0xff]  ;;  %v1571_v26 = vld [vmem:[%s2554_s2 + $0x158] sm:$0xff]  ;;  %v1566_v34 = vld [vmem:[%s2554_s2 + $0x130] sm:$0xff] }
  0x24   : > { %1802 = vmatprep.subr.mxu0 %v1536_v27  ;;  %1819 = vmatprep.subr.mxu1 %v1557_v35  ;;  %v1572_v25 = vld [vmem:[%s2554_s2 + $0x160] sm:$0xff]  ;;  %v1567_v33 = vld [vmem:[%s2554_s2 + $0x138] sm:$0xff] }
  0x25   : > { %1803 = vmatpush3.msra.mxu0 %v1536_v27  ;;  %1820 = vmatpush3.msra.mxu1 %v1557_v35  ;;  %v1565_v35 = vld [vmem:[%s2554_s2 + $0x128] sm:$0xff] }
  0x26   : > { %1804 = vmatprep.subr.mxu0 %v1535_v28  ;;  %1821 = vmatprep.subr.mxu1 %v1556_v38 }
  0x27   : > { %1805 = vmatpush3.msra.mxu0 %v1535_v28  ;;  %1822 = vmatpush3.msra.mxu1 %v1556_v38  ;;  %v1562_v38 = vld [vmem:[%s2554_s2 + $0x110] sm:$0xff] }
  0x28   : > { %1806 = vmatprep.subr.mxu0 %v1534_v29  ;;  %1823 = vmatprep.subr.mxu1 %v1555_v39 }
  0x29   : > { %1807 = vmatpush3.msra.mxu0 %v1534_v29  ;;  %1824 = vmatpush3.msra.mxu1 %v1555_v39  ;;  %v1561_v39 = vld [vmem:[%s2554_s2 + $0x108] sm:$0xff] }
  0x2a   : > { %1808 = vmatprep.subr.mxu0 %v1533_v30  ;;  %1825 = vmatprep.subr.mxu1 %v1554_v41 }
  0x2b   : > { %1809 = vmatpush3.msra.mxu0 %v1533_v30  ;;  %1826 = vmatpush3.msra.mxu1 %v1554_v41  ;;  %v1570_v30 = vld [vmem:[%s2554_s2 + $0x150] sm:$0xff] }
  0x2c   : > { %1810 = vmatprep.subr.mxu0 %v1532_v31  ;;  %1827 = vmatprep.subr.mxu1 %v1553_v44 }
  0x2d   : > { %1811 = vmatpush3.msra.mxu0 %v1532_v31  ;;  %1828 = vmatpush3.msra.mxu1 %v1553_v44  ;;  %v1569_v31 = vld [vmem:[%s2554_s2 + $0x148] sm:$0xff]  ;;  %v1592_v44 = vld [vmem:[%s2555_s3 + $0xf0] sm:$0xff] }
  0x2e   : > { %1813 = vmatmul.mubr.msk.f32.vlgmr.msra.gmra.mxu0 %vm425_vm0, %v621_v32  ;;  %1850 = vmatprep.subr.mxu0 %v755_v36  ;;  %v1568_v32 = vld [vmem:[%s2554_s2 + $0x140] sm:$0xff] }
  0x2f   : > { %1851 = vmatpush3.msra.mxu0 %v755_v36  ;;  %1829 = vmatprep.subr.mxu1 %v1552_v45  ;;  %v1564_v36 = vld [vmem:[%s2554_s2 + $0x120] sm:$0xff] }
  0x30   : > { %1852 = vmatprep.subr.mxu0 %v754_v37  ;;  %1830 = vmatpush3.msra.mxu1 %v1552_v45  ;;  %v1063_v45 = vld [vmem:[%s2555_s3 + $0x70] sm:$0xff] }
  0x31   : > { %1853 = vmatpush3.msra.mxu0 %v754_v37  ;;  %1831 = vmatprep.subr.mxu1 %v1551_v46  ;;  %v1563_v37 = vld [vmem:[%s2554_s2 + $0x118] sm:$0xff] }
  0x32   : > { %1854 = vmatprep.subr.mxu0 %v753_v40  ;;  %1832 = vmatpush3.msra.mxu1 %v1551_v46  ;;  %v1591_v46 = vld [vmem:[%s2555_s3 + $0xe8] sm:$0xff] }
  0x33   : > { %1855 = vmatpush3.msra.mxu0 %v753_v40  ;;  %1833 = vmatprep.subr.mxu1 %v1550_v47  ;;  %v1560_v40 = vld [vmem:[%s2554_s2 + $0x100] sm:$0xff] }
  0x34   : > { %1856 = vmatprep.subr.mxu0 %v752_v42  ;;  %1834 = vmatpush3.msra.mxu1 %v1550_v47  ;;  %v1062_v47 = vld [vmem:[%s2555_s3 + $0x68] sm:$0xff] }
  0x35   : > { %1857 = vmatpush3.msra.mxu0 %v752_v42  ;;  %1835 = vmatprep.subr.mxu1 %v1549_v49  ;;  %v1593_v42 = vld [vmem:[%s2555_s3 + $0xf8] sm:$0xff] }
  0x36   : > { %1858 = vmatprep.subr.mxu0 %v751_v43  ;;  %1836 = vmatpush3.msra.mxu1 %v1549_v49  ;;  %v1061_v49 = vld [vmem:[%s2555_s3 + $0x60] sm:$0xff] }
  0x37   : > { %1859 = vmatpush3.msra.mxu0 %v751_v43  ;;  %1837 = vmatprep.subr.mxu1 %v1548_v51  ;;  %v1064_v43 = vld [vmem:[%s2555_s3 + $0x78] sm:$0xff] }
  0x38   : > { %1860 = vmatprep.subr.mxu0 %v750_v48  ;;  %1838 = vmatpush3.msra.mxu1 %v1548_v51  ;;  %v1060_v51 = vld [vmem:[%s2555_s3 + $0x58] sm:$0xff] }
  0x39   : > { %1861 = vmatpush3.msra.mxu0 %v750_v48  ;;  %1839 = vmatprep.subr.mxu1 %v1547_v53  ;;  %v1590_v48 = vld [vmem:[%s2555_s3 + $0xe0] sm:$0xff] }
  0x3a   : > { %1862 = vmatprep.subr.mxu0 %v749_v50  ;;  %1840 = vmatpush3.msra.mxu1 %v1547_v53  ;;  %v1587_v53 = vld [vmem:[%s2555_s3 + $0xc8] sm:$0xff] }
  0x3b   : > { %1863 = vmatpush3.msra.mxu0 %v749_v50  ;;  %1841 = vmatprep.subr.mxu1 %v1546_v55  ;;  %v1589_v50 = vld [vmem:[%s2555_s3 + $0xd8] sm:$0xff] }
  0x3c   : > { %1864 = vmatprep.subr.mxu0 %v748_v52  ;;  %1842 = vmatpush3.msra.mxu1 %v1546_v55  ;;  %v1585_v55 = vld [vmem:[%s2555_s3 + $0xb8] sm:$0xff] }
  0x3d   : > { %1865 = vmatpush3.msra.mxu0 %v748_v52  ;;  %1843 = vmatprep.subr.mxu1 %v1545_v57  ;;  %v1588_v52 = vld [vmem:[%s2555_s3 + $0xd0] sm:$0xff] }
  0x3e   : > { %1866 = vmatprep.subr.mxu0 %v747_v54  ;;  %1844 = vmatpush3.msra.mxu1 %v1545_v57  ;;  %v1059_v57 = vld [vmem:[%s2555_s3 + $0x50] sm:$0xff] }
  0x3f   : > { %1867 = vmatpush3.msra.mxu0 %v747_v54  ;;  %1845 = vmatprep.subr.mxu1 %v1544_v59  ;;  %v1586_v54 = vld [vmem:[%s2555_s3 + $0xc0] sm:$0xff] }
  0x40   : > { %1868 = vmatprep.subr.mxu0 %v746_v56  ;;  %1846 = vmatpush3.msra.mxu1 %v1544_v59  ;;  %v1058_v59 = vld [vmem:[%s2555_s3 + $0x48] sm:$0xff] }
  0x41   : > { %1869 = vmatpush3.msra.mxu0 %v746_v56  ;;  %1885 = vmatprep.subr.mxu1 %v1575_v61  ;;  %v1584_v56 = vld [vmem:[%s2555_s3 + $0xb0] sm:$0xff] }
  0x42   : > { %1870 = vmatprep.subr.mxu0 %v745_v58 }
  0x43   : > { %1871 = vmatpush3.msra.mxu0 %v745_v58  ;;  %v1583_v58 = vld [vmem:[%s2555_s3 + $0xa8] sm:$0xff] }
  0x44   : > { %1872 = vmatprep.subr.mxu0 %v744_v60 }
  0x45   : > { %1873 = vmatpush3.msra.mxu0 %v744_v60  ;;  %v1582_v60 = vld [vmem:[%s2555_s3 + $0xa0] sm:$0xff] }
  0x46   : > { %1874 = vmatprep.subr.mxu0 %v743_v62 }
  0x47   : > { %1875 = vmatpush3.msra.mxu0 %v743_v62  ;;  %v1581_v62 = vld [vmem:[%s2555_s3 + $0x98] sm:$0xff] }
  0x48   : > { %1876 = vmatprep.subr.mxu0 %v742_v63 }
  0x49   : > { %1877 = vmatpush3.msra.mxu0 %v742_v63  ;;  %v1056_v63 = vld [vmem:[%s2555_s3 + $0x38] sm:$0xff] }
  0x4a   : > { %1878 = vmatprep.subr.mxu0 %v741_v0 }
  0x4b   : > { %1879 = vmatpush3.msra.mxu0 %v741_v0  ;;  %v1580_v0 = vld [vmem:[%s2555_s3 + $0x90] sm:$0xff] }
  0x4c   : > { %1880 = vmatprep.subr.mxu0 %v740_v1 }
  0x4d   : > { %1881 = vmatpush3.msra.mxu0 %v740_v1  ;;  %v1055_v1 = vld [vmem:[%s2555_s3 + $0x30] sm:$0xff] }
  0x4e   : > { %1920 = vmatprep.subr.mxu0 %v1593_v42 }
  0xdd   : > { %v1776_v2 = vpop.f32.mrf.mxu0 }
  0xde   : > { %v1795_v3 = vpop.f32.mrf.mxu1 }
  0xdf   : > { %v530_v5 = vpop.f32.mrf.mxu0  ;;  %v617_v7 = vadd.f32 %v1795_v3, %v1776_v2  ;;  %v1579_v2 = vld [vmem:[%s2555_s3 + $0x88] sm:$0xff] }
  0xe0   : > { %v611_v6 = vpop.f32.mrf.mxu1  ;;  %v1054_v3 = vld [vmem:[%s2555_s3 + $0x28] sm:$0xff] }
  0xe1   : > { %v612_v10 = vadd.f32 %v611_v6, %v530_v5  ;;  %v1578_v5 = vld [vmem:[%s2555_s3 + $0x80] sm:$0xff] }
  0xe2   : > { %v1053_v6 = vld [vmem:[%s2555_s3 + $0x20] sm:$0xff] }
  0xee   : > { %v1814_v8 = vpop.f32.mrf.mxu0 }
  0xef   : > { %v713_v11 = vadd.f32 %v1814_v8, %v617_v7  ;;  %v1609_v7 = vld [vmem:[%s2555_s3 + $0x178] sm:$0xff] }
  0xf0   : > { %v703_v13 = vpop.f32.mrf.mxu0  ;;  %v1052_v8 = vld [vmem:[%s2555_s3 + $0x18] sm:$0xff] }
  0xf1   : > { %v722_v14 = vmul.f32 %v1542_v9, %v713_v11  ;;  %v712_v15 = vadd.f32 %v703_v13, %v612_v10  ;;  %v1050_v10 = vld [vmem:[%s2555_s3 + $0x8] sm:$0xff]  ;;  %v1049_v11 = vld [vmem:[%s2555_s3] sm:$0xff] }
  0xf3   : > { %v731_v16 = vadd.f32 %v1543_v12, %v722_v14  ;;  %v721_v17 = vmul.f32 %v1542_v9, %v712_v15  ;;  %v1051_v9 = vld [vmem:[%s2555_s3 + $0x10] sm:$0xff] }
  0xf5   : > { %v733_v18 = vmul.f32 0.01, %v731_v16  ;;  %v730_v19 = vadd.f32 %v1543_v12, %v721_v17 }
  0xf7   : > { %v735_v20 = vmax.f32 %v731_v16, %v733_v18  ;;  %v732_v21 = vmul.f32 0.01, %v730_v19  ;;  %v1576_v18 = vld [vmem:[%s2559_s7] ss:$0 sm:$0xff] }
  0xf9   : > { %737 = vst [vmem:[#allocation3 + $0x9] sm:$0xff] %v735_v20  ;;  %v734_v22 = vmax.f32 %v730_v19, %v732_v21  ;;  %v1577_v21 = vld [vmem:[%s2560_s8] ss:$0 sm:$0xff] }
  0xfb   : > { %736 = vst [vmem:[#allocation3 + $0x1] sm:$0xff] %v734_v22  ;;  %1847 = vmatprep.mubr.f32.mxu1 %v734_v22 }
  0xfc   : > { %1848 = vmatmul.mubr.f32.vlgmr.msra.gmra.mxu1 %v735_v20 }
  0xfd   : > { %1886 = vmatpush3.msra.mxu1 %v1575_v61  ;;  %v1057_v61 = vld [vmem:[%s2555_s3 + $0x40] sm:$0xff] }
  0xfe   : > { %1887 = vmatprep.subr.mxu1 %v1574_v23 }
  0xff   : > { %1888 = vmatpush3.msra.mxu1 %v1574_v23 }
 0x100   : > { %1889 = vmatprep.subr.mxu1 %v1573_v24  ;;  %v926_v41 = vld [vmem:[#allocation3 + $0xa] sm:$0xff] }
 0x101   : > { %1890 = vmatpush3.msra.mxu1 %v1573_v24 }
 0x102   : > { %v738_v27 = vld [vmem:[#allocation3] sm:$0xff]  ;;  %v739_v28 = vld [vmem:[#allocation3 + $0x8] sm:$0xff]  ;;  %1891 = vmatprep.subr.mxu1 %v1572_v25 }
 0x103   : > { %v925_v29 = vld [vmem:[#allocation3 + $0x2] sm:$0xff]  ;;  %1882 = vmatprep.mubr.f32.mxu0 %v738_v27  ;;  %1892 = vmatpush3.msra.mxu1 %v1572_v25 }
 0x104   : > { %1917 = vmatprep.mubr.f32.mxu1 %v925_v29  ;;  %1883 = vmatmul.mubr.f32.vlgmr.msra.gmra.mxu0 %v739_v28 }
 0x105   : > { %1893 = vmatprep.subr.mxu1 %v1571_v26  ;;  %1921 = vmatpush3.msra.mxu0 %v1593_v42  ;;  %v1601_v42 = vld [vmem:[%s2555_s3 + $0x138] sm:$0xff] }
 0x106   : > { %1894 = vmatpush3.msra.mxu1 %v1571_v26  ;;  %1922 = vmatprep.subr.mxu0 %v1592_v44 }
 0x107   : > { %1895 = vmatprep.subr.mxu1 %v1570_v30  ;;  %1923 = vmatpush3.msra.mxu0 %v1592_v44  ;;  %v1599_v44 = vld [vmem:[%s2555_s3 + $0x128] sm:$0xff] }
 0x108   : > { %1896 = vmatpush3.msra.mxu1 %v1570_v30  ;;  %1924 = vmatprep.subr.mxu0 %v1591_v46 }
 0x109   : > { %1897 = vmatprep.subr.mxu1 %v1569_v31  ;;  %1925 = vmatpush3.msra.mxu0 %v1591_v46  ;;  %v1597_v46 = vld [vmem:[%s2555_s3 + $0x118] sm:$0xff] }
 0x10a   : > { %1898 = vmatpush3.msra.mxu1 %v1569_v31  ;;  %1926 = vmatprep.subr.mxu0 %v1590_v48 }
 0x10b   : > { %1899 = vmatprep.subr.mxu1 %v1568_v32  ;;  %1927 = vmatpush3.msra.mxu0 %v1590_v48  ;;  %v1595_v48 = vld [vmem:[%s2555_s3 + $0x108] sm:$0xff] }
 0x10c   : > { %1900 = vmatpush3.msra.mxu1 %v1568_v32  ;;  %1928 = vmatprep.subr.mxu0 %v1589_v50  ;;  %v1608_v32 = vld [vmem:[%s2555_s3 + $0x170] sm:$0xff] }
 0x10d   : > { %1901 = vmatprep.subr.mxu1 %v1567_v33  ;;  %1929 = vmatpush3.msra.mxu0 %v1589_v50 }
 0x10e   : > { %1902 = vmatpush3.msra.mxu1 %v1567_v33  ;;  %1930 = vmatprep.subr.mxu0 %v1588_v52  ;;  %v1607_v33 = vld [vmem:[%s2555_s3 + $0x168] sm:$0xff] }
 0x10f   : > { %1903 = vmatprep.subr.mxu1 %v1566_v34  ;;  %1931 = vmatpush3.msra.mxu0 %v1588_v52 }
 0x110   : > { %1904 = vmatpush3.msra.mxu1 %v1566_v34  ;;  %1932 = vmatprep.subr.mxu0 %v1587_v53  ;;  %v1606_v34 = vld [vmem:[%s2555_s3 + $0x160] sm:$0xff] }
 0x111   : > { %1905 = vmatprep.subr.mxu1 %v1565_v35  ;;  %1933 = vmatpush3.msra.mxu0 %v1587_v53 }
 0x112   : > { %1906 = vmatpush3.msra.mxu1 %v1565_v35  ;;  %1934 = vmatprep.subr.mxu0 %v1586_v54  ;;  %v1605_v35 = vld [vmem:[%s2555_s3 + $0x158] sm:$0xff] }
 0x113   : > { %1907 = vmatprep.subr.mxu1 %v1564_v36  ;;  %1935 = vmatpush3.msra.mxu0 %v1586_v54 }
 0x114   : > { %1908 = vmatpush3.msra.mxu1 %v1564_v36  ;;  %1936 = vmatprep.subr.mxu0 %v1585_v55 }
 0x115   : > { %1909 = vmatprep.subr.mxu1 %v1563_v37  ;;  %1937 = vmatpush3.msra.mxu0 %v1585_v55 }
 0x116   : > { %1910 = vmatpush3.msra.mxu1 %v1563_v37  ;;  %1938 = vmatprep.subr.mxu0 %v1584_v56 }
 0x117   : > { %1911 = vmatprep.subr.mxu1 %v1562_v38  ;;  %1939 = vmatpush3.msra.mxu0 %v1584_v56 }
 0x118   : > { %1912 = vmatpush3.msra.mxu1 %v1562_v38  ;;  %1940 = vmatprep.subr.mxu0 %v1583_v58 }
 0x119   : > { %1913 = vmatprep.subr.mxu1 %v1561_v39  ;;  %1941 = vmatpush3.msra.mxu0 %v1583_v58 }
 0x11a   : > { %1914 = vmatpush3.msra.mxu1 %v1561_v39  ;;  %1942 = vmatprep.subr.mxu0 %v1582_v60  ;;  %v1604_v39 = vld [vmem:[%s2555_s3 + $0x150] sm:$0xff] }
 0x11b   : > { %1915 = vmatprep.subr.mxu1 %v1560_v40  ;;  %1943 = vmatpush3.msra.mxu0 %v1582_v60 }
 0x11c   : > { %1916 = vmatpush3.msra.mxu1 %v1560_v40  ;;  %1944 = vmatprep.subr.mxu0 %v1581_v62  ;;  %v1603_v40 = vld [vmem:[%s2555_s3 + $0x148] sm:$0xff] }
 0x11d   : > { %1918 = vmatmul.mubr.f32.vlgmr.msra.gmra.mxu1 %v926_v41  ;;  %1955 = vmatprep.subr.mxu1 %v1064_v43  ;;  %v1602_v41 = vld [vmem:[%s2555_s3 + $0x140] sm:$0xff] }
 0x11e   : > { %1956 = vmatpush3.msra.mxu1 %v1064_v43  ;;  %1945 = vmatpush3.msra.mxu0 %v1581_v62  ;;  %v1600_v43 = vld [vmem:[%s2555_s3 + $0x130] sm:$0xff]  ;;  %v1611_v62 = vld [vmem:[%s2561_s9] ss:$0 sm:$0xff] }
 0x11f   : > { %1957 = vmatprep.subr.mxu1 %v1063_v45  ;;  %1946 = vmatprep.subr.mxu0 %v1580_v0 }
 0x120   : > { %1958 = vmatpush3.msra.mxu1 %v1063_v45  ;;  %1947 = vmatpush3.msra.mxu0 %v1580_v0  ;;  %v1598_v45 = vld [vmem:[%s2555_s3 + $0x120] sm:$0xff] }
 0x121   : > { %1959 = vmatprep.subr.mxu1 %v1062_v47  ;;  %1948 = vmatprep.subr.mxu0 %v1579_v2  ;;  %v1612_v0 = vld [vmem:[%s2562_s10] ss:$0 sm:$0xff] }
 0x122   : > { %1960 = vmatpush3.msra.mxu1 %v1062_v47  ;;  %1949 = vmatpush3.msra.mxu0 %v1579_v2  ;;  %v1596_v47 = vld [vmem:[%s2555_s3 + $0x110] sm:$0xff] }
 0x123   : > { %1961 = vmatprep.subr.mxu1 %v1061_v49  ;;  %1950 = vmatprep.subr.mxu0 %v1578_v5 }
 0x124   : > { %1962 = vmatpush3.msra.mxu1 %v1061_v49  ;;  %1951 = vmatpush3.msra.mxu0 %v1578_v5  ;;  %v1594_v49 = vld [vmem:[%s2555_s3 + $0x100] sm:$0xff] }
 0x125   : > { %1963 = vmatprep.subr.mxu1 %v1060_v51  ;;  %1990 = vmatprep.subr.mxu0 %v1609_v7 }
 0x126   : > { %1964 = vmatpush3.msra.mxu1 %v1060_v51 }
 0x127   : > { %1965 = vmatprep.subr.mxu1 %v1059_v57 }
 0x128   : > { %1966 = vmatpush3.msra.mxu1 %v1059_v57 }
 0x129   : > { %1967 = vmatprep.subr.mxu1 %v1058_v59 }
 0x12a   : > { %1968 = vmatpush3.msra.mxu1 %v1058_v59 }
 0x12b   : > { %1969 = vmatprep.subr.mxu1 %v1057_v61 }
 0x12c   : > { %1970 = vmatpush3.msra.mxu1 %v1057_v61  ;;  %v1330_v61 = vld [vmem:[%s2556_s4] sm:$0xff] }
 0x12d   : > { %1971 = vmatprep.subr.mxu1 %v1056_v63 }
 0x12e   : > { %1972 = vmatpush3.msra.mxu1 %v1056_v63 }
 0x12f   : > { %1973 = vmatprep.subr.mxu1 %v1055_v1 }
 0x130   : > { %1974 = vmatpush3.msra.mxu1 %v1055_v1 }
 0x131   : > { %1975 = vmatprep.subr.mxu1 %v1054_v3 }
 0x132   : > { %1976 = vmatpush3.msra.mxu1 %v1054_v3 }
 0x133   : > { %1977 = vmatprep.subr.mxu1 %v1053_v6 }
 0x134   : > { %1978 = vmatpush3.msra.mxu1 %v1053_v6 }
 0x135   : > { %1979 = vmatprep.subr.mxu1 %v1052_v8 }
 0x136   : > { %1980 = vmatpush3.msra.mxu1 %v1052_v8 }
 0x137   : > { %1981 = vmatprep.subr.mxu1 %v1051_v9 }
 0x138   : > { %1982 = vmatpush3.msra.mxu1 %v1051_v9 }
 0x139   : > { %1983 = vmatprep.subr.mxu1 %v1050_v10 }
 0x13a   : > { %1984 = vmatpush3.msra.mxu1 %v1050_v10 }
 0x13b   : > { %1985 = vmatprep.subr.mxu1 %v1049_v11 }
 0x13c   : > { %1986 = vmatpush3.msra.mxu1 %v1049_v11 }
 0x13d   : > { %2025 = vmatprep.subr.mxu1 %v2050_v4 }
 0x1bc   : > { %v1849_v12 = vpop.f32.mrf.mxu1 }
 0x1be   : > { %v841_v14 = vpop.f32.mrf.mxu1 }
 0x1c4   : > { %v1884_v13 = vpop.f32.mrf.mxu0 }
 0x1c5   : > { %v922_v16 = vadd.f32 %v1884_v13, %v1849_v12 }
 0x1c6   : > { %v916_v15 = vpop.f32.mrf.mxu0 }
 0x1c7   : > { %v917_v19 = vadd.f32 %v916_v15, %v841_v14 }
 0x1dd   : > { %v1919_v17 = vpop.f32.mrf.mxu1 }
 0x1de   : > { %v1020_v20 = vadd.f32 %v1919_v17, %v922_v16 }
 0x1df   : > { %v1010_v22 = vpop.f32.mrf.mxu1 }
 0x1e0   : > { %v1029_v23 = vmul.f32 %v1576_v18, %v1020_v20  ;;  %v1019_v24 = vadd.f32 %v1010_v22, %v917_v19 }
 0x1e2   : > { %v1038_v25 = vadd.f32 %v1577_v21, %v1029_v23  ;;  %v1028_v26 = vmul.f32 %v1576_v18, %v1019_v24 }
 0x1e4   : > { %v1040_v27 = vmul.f32 0.01, %v1038_v25  ;;  %v1037_v28 = vadd.f32 %v1577_v21, %v1028_v26 }
 0x1e6   : > { %v1042_v29 = vmax.f32 %v1038_v25, %v1040_v27  ;;  %v1039_v30 = vmul.f32 0.01, %v1037_v28 }
 0x1e8   : > { %1044 = vst [vmem:[%s420_s19 + $0x8] sm:$0xff] %v1042_v29  ;;  %1046 = vst [vmem:[#allocation3 + $0x9] sm:$0xff] %v1042_v29  ;;  %v1041_v31 = vmax.f32 %v1037_v28, %v1039_v30 }
 0x1ea   : > { %1043 = vst [vmem:[%s420_s19] sm:$0xff] %v1041_v31  ;;  %1045 = vst [vmem:[#allocation3 + $0x1] sm:$0xff] %v1041_v31  ;;  %1952 = vmatprep.mubr.f32.mxu0 %v1041_v31 }
 0x1eb   : > { %1953 = vmatmul.mubr.f32.vlgmr.msra.gmra.mxu0 %v1042_v29 }
 0x1ec   : > { %1991 = vmatpush3.msra.mxu0 %v1609_v7 }
 0x1ed   : > { %1992 = vmatprep.subr.mxu0 %v1608_v32 }
 0x1ee   : > { %1993 = vmatpush3.msra.mxu0 %v1608_v32 }
 0x1ef   : > { %1994 = vmatprep.subr.mxu0 %v1607_v33  ;;  %v1235_v50 = vld [vmem:[#allocation3 + $0xa] sm:$0xff] }
 0x1f0   : > { %1995 = vmatpush3.msra.mxu0 %v1607_v33 }
 0x1f1   : > { %v1047_v36 = vld [vmem:[#allocation3] sm:$0xff]  ;;  %v1048_v37 = vld [vmem:[#allocation3 + $0x8] sm:$0xff]  ;;  %1996 = vmatprep.subr.mxu0 %v1606_v34 }
 0x1f2   : > { %v1234_v38 = vld [vmem:[#allocation3 + $0x2] sm:$0xff]  ;;  %1987 = vmatprep.mubr.f32.mxu1 %v1047_v36  ;;  %1997 = vmatpush3.msra.mxu0 %v1606_v34 }
 0x1f3   : > { %2022 = vmatprep.mubr.f32.mxu0 %v1234_v38  ;;  %1988 = vmatmul.mubr.f32.vlgmr.msra.gmra.mxu1 %v1048_v37 }
 0x1f4   : > { %1998 = vmatprep.subr.mxu0 %v1605_v35  ;;  %2029 = vmatprep.mubr.msk.f32.mxu1 %vm2051_vm2, %v2050_v4 }
 0x1f5   : > { %1999 = vmatpush3.msra.mxu0 %v1605_v35 }
 0x1f6   : > { %2000 = vmatprep.subr.mxu0 %v1604_v39 }
 0x1f7   : > { %2001 = vmatpush3.msra.mxu0 %v1604_v39 }
 0x1f8   : > { %2002 = vmatprep.subr.mxu0 %v1603_v40 }
 0x1f9   : > { %2003 = vmatpush3.msra.mxu0 %v1603_v40 }
 0x1fa   : > { %2004 = vmatprep.subr.mxu0 %v1602_v41 }
 0x1fb   : > { %2005 = vmatpush3.msra.mxu0 %v1602_v41 }
 0x1fc   : > { %2006 = vmatprep.subr.mxu0 %v1601_v42 }
 0x1fd   : > { %2007 = vmatpush3.msra.mxu0 %v1601_v42 }
 0x1fe   : > { %2008 = vmatprep.subr.mxu0 %v1600_v43 }
 0x1ff   : > { %2009 = vmatpush3.msra.mxu0 %v1600_v43 }
 0x200   : > { %2010 = vmatprep.subr.mxu0 %v1599_v44 }
 0x201   : > { %2011 = vmatpush3.msra.mxu0 %v1599_v44 }
 0x202   : > { %2012 = vmatprep.subr.mxu0 %v1598_v45 }
 0x203   : > { %2013 = vmatpush3.msra.mxu0 %v1598_v45 }
 0x204   : > { %2014 = vmatprep.subr.mxu0 %v1597_v46 }
 0x205   : > { %2015 = vmatpush3.msra.mxu0 %v1597_v46 }
 0x206   : > { %2016 = vmatprep.subr.mxu0 %v1596_v47 }
 0x207   : > { %2017 = vmatpush3.msra.mxu0 %v1596_v47 }
 0x208   : > { %2018 = vmatprep.subr.mxu0 %v1595_v48 }
 0x209   : > { %2019 = vmatpush3.msra.mxu0 %v1595_v48 }
 0x20a   : > { %2020 = vmatprep.subr.mxu0 %v1594_v49 }
 0x20b   : > { %2021 = vmatpush3.msra.mxu0 %v1594_v49 }
 0x20c   : > { %2023 = vmatmul.mubr.f32.vlgmr.msra.gmra.mxu0 %v1235_v50 }
 0x2ab   : > { %v1954_v51 = vpop.f32.mrf.mxu0 }
 0x2ad   : > { %v1150_v53 = vpop.f32.mrf.mxu0 }
 0x2b3   : > { %v1989_v52 = vpop.f32.mrf.mxu1 }
 0x2b4   : > { %v1231_v55 = vadd.f32 %v1989_v52, %v1954_v51 }
 0x2b5   : > { %v1225_v54 = vpop.f32.mrf.mxu1 }
 0x2b6   : > { %v1226_v57 = vadd.f32 %v1225_v54, %v1150_v53 }
 0x2cc   : > { %v2024_v56 = vpop.f32.mrf.mxu0 }
 0x2cd   : > { %v1329_v58 = vadd.f32 %v2024_v56, %v1231_v55 }
 0x2ce   : > { %v1319_v59 = vpop.f32.mrf.mxu0 }
 0x2cf   : > { %v1328_v60 = vadd.f32 %v1319_v59, %v1226_v57  ;;  %2026 = vmatpush3.msra.mxu1 %v1329_v58 }
 0x2d0   : > { %2027 = vmatprep.subr.mxu1 %v2050_v4 }
 0x2d1   : > { %2028 = vmatpush3.msra.mxu1 %v1328_v60 }
 0x2d2   : > { %2030 = vmatmul.mubr.msk.f32.vlgmr.msra.gmra.mxu1 %vm1331_vm3, %v1330_v61 }
 0x392   : > { %v1401_v63 = vpop.f32.mrf.mxu1 }
 0x393   : > { %v1412_v1 = vmul.f32 %v1611_v62, %v1401_v63 }
 0x394   : > { %v2031_v2 = vpop.f32.mrf.mxu1 }
 0x395   : > { %v1420_v3 = vadd.f32 %v1612_v0, %v1412_v1 }
 0x397   : > { %v1421_v5 = vmul.f32 0.01, %v1420_v3 }
 0x399   : > { %v1422_v4 = vmax.f32 %v1420_v3, %v1421_v5 }
 0x39b   : > { %1423 = vst.msk [vmem:[%s424_s29] sm:$0xff] %vm425_vm0, %v1422_v4 }
 0x39c PF: > { %s23_s21 = sadd.s32 1, %s2048_s21  }
 0x39d   : > { %p20_p4 = scmp.ge.s32.totalorder %s23_s21, 4  }
 0x39f   :  { %22 = sbr.rel (!%p20_p4) target bundleno = 1 (0x1), region = 112 }

</bundles_post_ra>
